<compile_context>
chip_gen: v5e
topology: v5e:2x2
jax: 0.10.0
libtpu: 0.0.40
codegen_flags: <defaults>
</compile_context>

<pallas_src>
import functools

import jax
import jax.numpy as jnp
from jax import lax
from jax.experimental import pallas as pl
from jax.experimental.pallas import tpu as pltpu


def _round_up(a, b):
    return ((a + b - 1) // b) * b


# --------------------------------------------------------------------------
# Pallas kernel: in-kernel im2col (from space-to-depth slabs) + matmul + bias
#                + ReLU6, for a 3x3 / stride-2 / pad-1 conv.
# --------------------------------------------------------------------------
def _conv3x3s2_kernel(w_ref, b_ref, x_ref, o_ref, patch_ref, *,
                      cin, ws, w_out, group, relu6):
    # w_ref    : (Cout, 9*Cin)      bf16   tap-major / ci-minor (tap = dy*3+dx)
    # b_ref    : (Cout, 1)          f32    folded BN shift / conv bias
    # x_ref    : (G, 4*Cin, W_in)   bf16   space-to-depth slabs
    # o_ref    : (Cout, G*W_out)    f32    lane-dense output tile
    # patch_ref: (9*Cin, W_out)     bf16   VMEM scratch (in-kernel im2col)
    for g in range(group):
        # Build the (9*Cin, W_out) patch block in VMEM: each tap is a
        # contiguous column-offset slice of the slab.
        for dy in range(3):
            for dx in range(3):
                t = dy * 3 + dx
                row = ((dy % 2) * 2 + (dx % 2)) * cin      # phase rows
                off = (dy // 2) * ws + (dx // 2)           # flat column offset
                patch_ref[t * cin:(t + 1) * cin, :] = \
                    x_ref[g, row:row + cin, off:off + w_out]
        y = jnp.dot(w_ref[...], patch_ref[...],
                    preferred_element_type=jnp.float32)    # (Cout, W_out) f32
        y = y + b_ref[...]
        if relu6:
            y = jnp.clip(y, 0.0, 6.0)
        o_ref[:, g * w_out:(g + 1) * w_out] = y.astype(o_ref.dtype)


# --------------------------------------------------------------------------
# JAX-side prep: one pass over the input -> per-image space-to-depth slabs.
# slab[n, (py*2+px)*C + c, i*Ws + j] = x_pad[c, n, 2i+py, 2j+px]
# --------------------------------------------------------------------------
def _space_to_depth_slabs(x_cm, pad, hs, ws, w_in, compute_dtype):
    c, n, h, w = x_cm.shape
    hp, wp = 2 * hs, 2 * ws                       # even padded sizes
    xp = jnp.pad(x_cm.astype(compute_dtype),
                 ((0, 0), (0, 0), (pad, hp - h - pad), (pad, wp - w - pad)))
    xs = xp.reshape(c, n, hs, 2, ws, 2)
    xs = xs.transpose(1, 3, 5, 0, 2, 4).reshape(n, 4 * c, hs * ws)
    return jnp.pad(xs, ((0, 0), (0, 0), (0, w_in - hs * ws)))


def fused_conv3x3s2(x_cm, w_hwio, shift, *, scale=None, relu6=True, pad=1,
                    compute_dtype=jnp.bfloat16, target_m=16384):
    """clip(conv3x3_s2(x, w*scale) + shift, 0, 6), channel-major in/out.

    x_cm: (Cin, N, H, W).  Returns (Cout, N, Ho, Wo) in f32.
    """
    c, n, h, w = x_cm.shape
    kh, kw, cin, cout = w_hwio.shape
    assert (kh, kw) == (3, 3) and cin == c
    if scale is not None:                          # fold BN scale into the weight
        w_hwio = w_hwio * scale.reshape(1, 1, 1, cout)

    ho = (h + 2 * pad - 3) // 2 + 1
    wo = (w + 2 * pad - 3) // 2 + 1
    hs = _round_up(h + 2 * pad, 2) // 2            # phase-grid height (>= ho)
    ws = _round_up(w + 2 * pad, 2) // 2            # phase-grid width  (>= wo)

    # Per-image slab widths: kernel computes w_out lane-dense columns per image,
    # reading up to an extra (Ws+1)-column halo inside the same slab.
    w_out = _round_up(hs * ws, 128)
    w_in = w_out + _round_up(ws + 1, 128)

    slabs = _space_to_depth_slabs(x_cm, pad, hs, ws, w_in, compute_dtype)  # (N,4C,W_in)

    # Group images per grid step: large M tile, but keep >=2 grid steps when
    # N >= 2 so v7x megacore can shard the "parallel" axis across both cores.
    g_target = min(8, max(1, target_m // w_out))
    g_cap = n if n < 2 else n // 2
    g = max(1, min(g_target, g_cap))
    while n % g:
        g -= 1
    grid = (n // g,)

    w_mat = w_hwio.reshape(9 * cin, cout).T.astype(compute_dtype)   # (Cout, 9*Cin)
    bias = shift.reshape(cout, 1).astype(jnp.float32)               # (Cout, 1)

    kernel = functools.partial(_conv3x3s2_kernel, cin=cin, ws=ws,
                               w_out=w_out, group=g, relu6=relu6)

    out = pl.pallas_call(
        kernel,
        out_shape=jax.ShapeDtypeStruct((cout, n * w_out), jnp.float32),
        grid=grid,
        in_specs=[
            pl.BlockSpec((cout, 9 * cin), lambda i: (0, 0)),    # folded weight (const)
            pl.BlockSpec((cout, 1), lambda i: (0, 0)),          # folded shift  (const)
            pl.BlockSpec((g, 4 * cin, w_in), lambda i: (i, 0, 0)),  # image-group slabs
        ],
        out_specs=pl.BlockSpec((cout, g * w_out), lambda i: (0, i)),  # lane-dense
        scratch_shapes=[pltpu.VMEM((9 * cin, w_out), compute_dtype)],
        compiler_params=pltpu.CompilerParams(
            dimension_semantics=("parallel",),
            vmem_limit_bytes=32 * 1024 * 1024),   # working set is a few MiB; safe on v7x (64 MiB)
    )(w_mat, bias, slabs)

    # (Cout, N*W_out) -> channel-major (Cout, N, Ho, Wo): drop pad/garbage columns.
    out = out.reshape(cout, n, w_out)[:, :, :hs * ws]
    out = out.reshape(cout, n, hs, ws)[:, :, :ho, :wo]
    return out


# --------------------------------------------------------------------------
# SkipEncoder forward (NCHW in, NCHW out, like PyTorch)
# --------------------------------------------------------------------------
def init_params(key):
    k1, k2, k3, k4, k5 = jax.random.split(key, 5)
    return {
        # HWIO conv weights (equivalent to PyTorch OIHW transposed)
        "w1": 0.1 * jax.random.normal(k1, (3, 3, 3, 8), jnp.float32),
        "bn_gamma": 1.0 + 0.1 * jax.random.normal(k2, (8,), jnp.float32),
        "bn_beta": 0.1 * jax.random.normal(k3, (8,), jnp.float32),
        "bn_mean": 0.05 * jnp.arange(8, dtype=jnp.float32),
        "bn_var": 1.0 + 0.1 * jnp.arange(8, dtype=jnp.float32) / 8.0,
        "w2": 0.1 * jax.random.normal(k4, (3, 3, 8, 16), jnp.float32),
        "b2": 0.1 * jax.random.normal(k5, (16,), jnp.float32),
    }


def skip_encoder_forward(params, x_nchw):
    # NCHW -> channel-major (C, N, H, W): kept for the whole internal pipeline.
    x_cm = jnp.transpose(x_nchw, (1, 0, 2, 3))

    # layer1: Conv(3->8, s2, p1, no bias) + BatchNorm2d(8, eval) + ReLU6
    bn_scale = params["bn_gamma"] / jnp.sqrt(params["bn_var"] + 1e-5)
    bn_shift = params["bn_beta"] - params["bn_mean"] * bn_scale
    x1_cm = fused_conv3x3s2(x_cm, params["w1"], bn_shift, scale=bn_scale, relu6=True)

    # layer2: Conv(8->16, s2, p1, bias) + ReLU6 -- consumes channel-major x1 directly.
    x2_cm = fused_conv3x3s2(x1_cm, params["w2"], params["b2"], relu6=True)

    # channel-major -> NCHW only for the returned tensors (leading-axis swap).
    return (jnp.transpose(x1_cm, (1, 0, 2, 3)), jnp.transpose(x2_cm, (1, 0, 2, 3)))


# --------------------------------------------------------------------------
# Pure-JAX reference (f32) for a correctness sanity check
# --------------------------------------------------------------------------
def _ref_conv(x_nhwc, w_hwio, scale, shift, stride, pad, relu6):
    y = lax.conv_general_dilated(
        x_nhwc, w_hwio, (stride, stride), [(pad, pad), (pad, pad)],
        dimension_numbers=("NHWC", "HWIO", "NHWC"))
    y = y * scale.reshape(1, 1, 1, -1) + shift.reshape(1, 1, 1, -1)
    if relu6:
        y = jnp.clip(y, 0.0, 6.0)
    return y


def skip_encoder_reference(params, x_nchw):
    x = jnp.transpose(x_nchw, (0, 2, 3, 1))
    bn_scale = params["bn_gamma"] / jnp.sqrt(params["bn_var"] + 1e-5)
    bn_shift = params["bn_beta"] - params["bn_mean"] * bn_scale
    x1 = _ref_conv(x, params["w1"], bn_scale, bn_shift, 2, 1, True)
    x2 = _ref_conv(x1, params["w2"], jnp.ones((16,), jnp.float32),
                   params["b2"], 2, 1, True)
    return (jnp.transpose(x1, (0, 3, 1, 2)), jnp.transpose(x2, (0, 3, 1, 2)))


if __name__ == "__main__":
    key = jax.random.PRNGKey(0)
    params = init_params(jax.random.PRNGKey(42))

    # NCHW input, like PyTorch
    x = jax.random.normal(key, (2, 3, 16, 16), jnp.float32)

    fwd = jax.jit(functools.partial(skip_encoder_forward, params))
    x1, x2 = fwd(x)
    jax.block_until_ready((x1, x2))

    assert x1.shape == (2, 8, 8, 8), x1.shape
    assert x2.shape == (2, 16, 4, 4), x2.shape

    r1, r2 = skip_encoder_reference(params, x)
    # bf16 MXU operands -> relaxed tolerance (f32 accumulation/affine/activation).
    assert jnp.allclose(x1, r1, atol=5e-2, rtol=5e-2)
    assert jnp.allclose(x2, r2, atol=5e-2, rtol=5e-2)

    print("KERNEL_OK")
</pallas_src>

<mosaic_0001>
module attributes {stable_mosaic.version = 11 : i64} {
  func.func @_conv3x3s2_kernel(%arg0: i32, %arg1: memref<8x27xbf16, #tpu.memory_space<vmem>>, %arg2: memref<8x1xf32, #tpu.memory_space<vmem>>, %arg3: memref<1x12x256xbf16, #tpu.memory_space<vmem>>, %arg4: memref<8x128xf32, #tpu.memory_space<vmem>>, %arg5: memref<27x128xbf16, #tpu.memory_space<vmem>>) attributes {dimension_semantics = [#tpu.dimension_semantics<parallel>], iteration_bounds = array<i64: 2>, scalar_prefetch = 0 : i64, scratch_operands = 1 : i64, tpu.core_type = #tpu.core_type<tc>, window_params = [{pipeline_mode = #tpu.pipeline_mode<synchronous>, transform_indices = @transform_0, window_bounds = array<i64: 8, 27>}, {pipeline_mode = #tpu.pipeline_mode<synchronous>, transform_indices = @transform_1, window_bounds = array<i64: 8, 1>}, {transform_indices = @transform_2, window_bounds = array<i64: 1, 12, 256>}, {transform_indices = @transform_3, window_bounds = array<i64: 8, 128>}]} {
    %c0 = arith.constant 0 : index
    %c0_0 = arith.constant 0 : index
    %c0_1 = arith.constant 0 : index
    %0 = vector.load %arg3[%c0, %c0_0, %c0_1] : memref<1x12x256xbf16, #tpu.memory_space<vmem>>, vector<1x3x128xbf16>
    %1 = vector.shape_cast %0 : vector<1x3x128xbf16> to vector<3x128xbf16>
    %c0_2 = arith.constant 0 : index
    %c0_3 = arith.constant 0 : index
    %2 = vector.load %arg5[%c0_2, %c0_3] : memref<27x128xbf16, #tpu.memory_space<vmem>>, vector<3x128xbf16>
    tpu.vector_store %arg5[%c0_2, %c0_3], %1 {strides = array<i32>} : memref<27x128xbf16, #tpu.memory_space<vmem>>, vector<3x128xbf16>,
    %c0_4 = arith.constant 0 : index
    %c3 = arith.constant 3 : index
    %c0_5 = arith.constant 0 : index
    %3 = vector.load %arg3[%c0_4, %c3, %c0_5] : memref<1x12x256xbf16, #tpu.memory_space<vmem>>, vector<1x3x128xbf16>
    %4 = vector.shape_cast %3 : vector<1x3x128xbf16> to vector<3x128xbf16>
    %c3_6 = arith.constant 3 : index
    %c0_7 = arith.constant 0 : index
    %5 = vector.load %arg5[%c3_6, %c0_7] : memref<27x128xbf16, #tpu.memory_space<vmem>>, vector<3x128xbf16>
    tpu.vector_store %arg5[%c3_6, %c0_7], %4 {strides = array<i32>} : memref<27x128xbf16, #tpu.memory_space<vmem>>, vector<3x128xbf16>,
    %c0_8 = arith.constant 0 : index
    %c0_9 = arith.constant 0 : index
    %c1 = arith.constant 1 : index
    %6 = vector.load %arg3[%c0_8, %c0_9, %c1] : memref<1x12x256xbf16, #tpu.memory_space<vmem>>, vector<1x3x128xbf16>
    %7 = vector.shape_cast %6 : vector<1x3x128xbf16> to vector<3x128xbf16>
    %c6 = arith.constant 6 : index
    %c0_10 = arith.constant 0 : index
    %8 = vector.load %arg5[%c6, %c0_10] : memref<27x128xbf16, #tpu.memory_space<vmem>>, vector<3x128xbf16>
    tpu.vector_store %arg5[%c6, %c0_10], %7 {strides = array<i32>} : memref<27x128xbf16, #tpu.memory_space<vmem>>, vector<3x128xbf16>,
    %c0_11 = arith.constant 0 : index
    %c6_12 = arith.constant 6 : index
    %c0_13 = arith.constant 0 : index
    %9 = vector.load %arg3[%c0_11, %c6_12, %c0_13] : memref<1x12x256xbf16, #tpu.memory_space<vmem>>, vector<1x3x128xbf16>
    %10 = vector.shape_cast %9 : vector<1x3x128xbf16> to vector<3x128xbf16>
    %c9 = arith.constant 9 : index
    %c0_14 = arith.constant 0 : index
    %11 = vector.load %arg5[%c9, %c0_14] : memref<27x128xbf16, #tpu.memory_space<vmem>>, vector<3x128xbf16>
    tpu.vector_store %arg5[%c9, %c0_14], %10 {strides = array<i32>} : memref<27x128xbf16, #tpu.memory_space<vmem>>, vector<3x128xbf16>,
    %c0_15 = arith.constant 0 : index
    %c9_16 = arith.constant 9 : index
    %c0_17 = arith.constant 0 : index
    %12 = vector.load %arg3[%c0_15, %c9_16, %c0_17] : memref<1x12x256xbf16, #tpu.memory_space<vmem>>, vector<1x3x128xbf16>
    %13 = vector.shape_cast %12 : vector<1x3x128xbf16> to vector<3x128xbf16>
    %c12 = arith.constant 12 : index
    %c0_18 = arith.constant 0 : index
    %14 = vector.load %arg5[%c12, %c0_18] : memref<27x128xbf16, #tpu.memory_space<vmem>>, vector<3x128xbf16>
    tpu.vector_store %arg5[%c12, %c0_18], %13 {strides = array<i32>} : memref<27x128xbf16, #tpu.memory_space<vmem>>, vector<3x128xbf16>,
    %c0_19 = arith.constant 0 : index
    %c6_20 = arith.constant 6 : index
    %c1_21 = arith.constant 1 : index
    %15 = vector.load %arg3[%c0_19, %c6_20, %c1_21] : memref<1x12x256xbf16, #tpu.memory_space<vmem>>, vector<1x3x128xbf16>
    %16 = vector.shape_cast %15 : vector<1x3x128xbf16> to vector<3x128xbf16>
    %c15 = arith.constant 15 : index
    %c0_22 = arith.constant 0 : index
    %17 = vector.load %arg5[%c15, %c0_22] : memref<27x128xbf16, #tpu.memory_space<vmem>>, vector<3x128xbf16>
    tpu.vector_store %arg5[%c15, %c0_22], %16 {strides = array<i32>} : memref<27x128xbf16, #tpu.memory_space<vmem>>, vector<3x128xbf16>,
    %c0_23 = arith.constant 0 : index
    %c0_24 = arith.constant 0 : index
    %c9_25 = arith.constant 9 : index
    %18 = vector.load %arg3[%c0_23, %c0_24, %c9_25] : memref<1x12x256xbf16, #tpu.memory_space<vmem>>, vector<1x3x128xbf16>
    %19 = vector.shape_cast %18 : vector<1x3x128xbf16> to vector<3x128xbf16>
    %c18 = arith.constant 18 : index
    %c0_26 = arith.constant 0 : index
    %20 = vector.load %arg5[%c18, %c0_26] : memref<27x128xbf16, #tpu.memory_space<vmem>>, vector<3x128xbf16>
    tpu.vector_store %arg5[%c18, %c0_26], %19 {strides = array<i32>} : memref<27x128xbf16, #tpu.memory_space<vmem>>, vector<3x128xbf16>,
    %c0_27 = arith.constant 0 : index
    %c3_28 = arith.constant 3 : index
    %c9_29 = arith.constant 9 : index
    %21 = vector.load %arg3[%c0_27, %c3_28, %c9_29] : memref<1x12x256xbf16, #tpu.memory_space<vmem>>, vector<1x3x128xbf16>
    %22 = vector.shape_cast %21 : vector<1x3x128xbf16> to vector<3x128xbf16>
    %c21 = arith.constant 21 : index
    %c0_30 = arith.constant 0 : index
    %23 = vector.load %arg5[%c21, %c0_30] : memref<27x128xbf16, #tpu.memory_space<vmem>>, vector<3x128xbf16>
    tpu.vector_store %arg5[%c21, %c0_30], %22 {strides = array<i32>} : memref<27x128xbf16, #tpu.memory_space<vmem>>, vector<3x128xbf16>,
    %c0_31 = arith.constant 0 : index
    %c0_32 = arith.constant 0 : index
    %c10 = arith.constant 10 : index
    %24 = vector.load %arg3[%c0_31, %c0_32, %c10] : memref<1x12x256xbf16, #tpu.memory_space<vmem>>, vector<1x3x128xbf16>
    %25 = vector.shape_cast %24 : vector<1x3x128xbf16> to vector<3x128xbf16>
    %c24 = arith.constant 24 : index
    %c0_33 = arith.constant 0 : index
    %26 = vector.load %arg5[%c24, %c0_33] : memref<27x128xbf16, #tpu.memory_space<vmem>>, vector<3x128xbf16>
    tpu.vector_store %arg5[%c24, %c0_33], %25 {strides = array<i32>} : memref<27x128xbf16, #tpu.memory_space<vmem>>, vector<3x128xbf16>,
    %c0_34 = arith.constant 0 : index
    %c0_35 = arith.constant 0 : index
    %27 = vector.load %arg1[%c0_34, %c0_35] : memref<8x27xbf16, #tpu.memory_space<vmem>>, vector<8x27xbf16>
    %c0_36 = arith.constant 0 : index
    %c0_37 = arith.constant 0 : index
    %28 = vector.load %arg5[%c0_36, %c0_37] : memref<27x128xbf16, #tpu.memory_space<vmem>>, vector<27x128xbf16>
    %cst = arith.constant dense<0.000000e+00> : vector<8x128xf32>
    %29 = tpu.matmul %27, %28, %cst {dimension_numbers = #tpu.dot_dimension_numbers<[1], [0], [0], [1], [0, 0, 1, 1], [], []>} : vector<8x27xbf16>, vector<27x128xbf16>, vector<8x128xf32> -> vector<8x128xf32>
    %c0_38 = arith.constant 0 : index
    %c0_39 = arith.constant 0 : index
    %30 = vector.load %arg2[%c0_38, %c0_39] : memref<8x1xf32, #tpu.memory_space<vmem>>, vector<8x1xf32>
    %31 = vector.broadcast %30 : vector<8x1xf32> to vector<8x128xf32>
    %32 = arith.addf %29, %31 : vector<8x128xf32>
    %cst_40 = arith.constant 0.000000e+00 : f32
    %cst_41 = arith.constant 6.000000e+00 : f32
    %33 = vector.broadcast %cst_40 : f32 to vector<8x128xf32>
    %34 = arith.maximumf %33, %32 : vector<8x128xf32>
    %35 = vector.broadcast %cst_41 : f32 to vector<8x128xf32>
    %36 = arith.minimumf %35, %34 : vector<8x128xf32>
    %c0_42 = arith.constant 0 : index
    %c0_43 = arith.constant 0 : index
    %37 = vector.load %arg4[%c0_42, %c0_43] : memref<8x128xf32, #tpu.memory_space<vmem>>, vector<8x128xf32>
    tpu.vector_store %arg4[%c0_42, %c0_43], %36 {strides = array<i32>} : memref<8x128xf32, #tpu.memory_space<vmem>>, vector<8x128xf32>,
    return
  }
  func.func @transform_0(%arg0: i32) -> (i32, i32) {
    %c0_i32 = arith.constant 0 : i32
    %c0_i32_0 = arith.constant 0 : i32
    %c0_i32_1 = arith.constant 0 : i32
    return %c0_i32, %c0_i32_0 : i32, i32
  }
  func.func @transform_1(%arg0: i32) -> (i32, i32) {
    %c0_i32 = arith.constant 0 : i32
    %c0_i32_0 = arith.constant 0 : i32
    %c0_i32_1 = arith.constant 0 : i32
    return %c0_i32, %c0_i32_0 : i32, i32
  }
  func.func @transform_2(%arg0: i32) -> (i32, i32, i32) {
    %c0_i32 = arith.constant 0 : i32
    %c0_i32_0 = arith.constant 0 : i32
    %c0_i32_1 = arith.constant 0 : i32
    return %arg0, %c0_i32, %c0_i32_0 : i32, i32, i32
  }
  func.func @transform_3(%arg0: i32) -> (i32, i32) {
    %c0_i32 = arith.constant 0 : i32
    %c0_i32_0 = arith.constant 0 : i32
    return %c0_i32, %arg0 : i32, i32
  }
}

module attributes {stable_mosaic.version = 11 : i64} {
  func.func @_conv3x3s2_kernel(%arg0: i32, %arg1: memref<16x72xbf16, #tpu.memory_space<vmem>>, %arg2: memref<16x1xf32, #tpu.memory_space<vmem>>, %arg3: memref<1x32x256xbf16, #tpu.memory_space<vmem>>, %arg4: memref<16x128xf32, #tpu.memory_space<vmem>>, %arg5: memref<72x128xbf16, #tpu.memory_space<vmem>>) attributes {dimension_semantics = [#tpu.dimension_semantics<parallel>], iteration_bounds = array<i64: 2>, scalar_prefetch = 0 : i64, scratch_operands = 1 : i64, tpu.core_type = #tpu.core_type<tc>, window_params = [{pipeline_mode = #tpu.pipeline_mode<synchronous>, transform_indices = @transform_0, window_bounds = array<i64: 16, 72>}, {pipeline_mode = #tpu.pipeline_mode<synchronous>, transform_indices = @transform_1, window_bounds = array<i64: 16, 1>}, {transform_indices = @transform_2, window_bounds = array<i64: 1, 32, 256>}, {transform_indices = @transform_3, window_bounds = array<i64: 16, 128>}]} {
    %c0 = arith.constant 0 : index
    %c0_0 = arith.constant 0 : index
    %c0_1 = arith.constant 0 : index
    %0 = vector.load %arg3[%c0, %c0_0, %c0_1] : memref<1x32x256xbf16, #tpu.memory_space<vmem>>, vector<1x8x128xbf16>
    %1 = vector.shape_cast %0 : vector<1x8x128xbf16> to vector<8x128xbf16>
    %c0_2 = arith.constant 0 : index
    %c0_3 = arith.constant 0 : index
    %2 = vector.load %arg5[%c0_2, %c0_3] : memref<72x128xbf16, #tpu.memory_space<vmem>>, vector<8x128xbf16>
    tpu.vector_store %arg5[%c0_2, %c0_3], %1 {strides = array<i32>} : memref<72x128xbf16, #tpu.memory_space<vmem>>, vector<8x128xbf16>,
    %c0_4 = arith.constant 0 : index
    %c8 = arith.constant 8 : index
    %c0_5 = arith.constant 0 : index
    %3 = vector.load %arg3[%c0_4, %c8, %c0_5] : memref<1x32x256xbf16, #tpu.memory_space<vmem>>, vector<1x8x128xbf16>
    %4 = vector.shape_cast %3 : vector<1x8x128xbf16> to vector<8x128xbf16>
    %c8_6 = arith.constant 8 : index
    %c0_7 = arith.constant 0 : index
    %5 = vector.load %arg5[%c8_6, %c0_7] : memref<72x128xbf16, #tpu.memory_space<vmem>>, vector<8x128xbf16>
    tpu.vector_store %arg5[%c8_6, %c0_7], %4 {strides = array<i32>} : memref<72x128xbf16, #tpu.memory_space<vmem>>, vector<8x128xbf16>,
    %c0_8 = arith.constant 0 : index
    %c0_9 = arith.constant 0 : index
    %c1 = arith.constant 1 : index
    %6 = vector.load %arg3[%c0_8, %c0_9, %c1] : memref<1x32x256xbf16, #tpu.memory_space<vmem>>, vector<1x8x128xbf16>
    %7 = vector.shape_cast %6 : vector<1x8x128xbf16> to vector<8x128xbf16>
    %c16 = arith.constant 16 : index
    %c0_10 = arith.constant 0 : index
    %8 = vector.load %arg5[%c16, %c0_10] : memref<72x128xbf16, #tpu.memory_space<vmem>>, vector<8x128xbf16>
    tpu.vector_store %arg5[%c16, %c0_10], %7 {strides = array<i32>} : memref<72x128xbf16, #tpu.memory_space<vmem>>, vector<8x128xbf16>,
    %c0_11 = arith.constant 0 : index
    %c16_12 = arith.constant 16 : index
    %c0_13 = arith.constant 0 : index
    %9 = vector.load %arg3[%c0_11, %c16_12, %c0_13] : memref<1x32x256xbf16, #tpu.memory_space<vmem>>, vector<1x8x128xbf16>
    %10 = vector.shape_cast %9 : vector<1x8x128xbf16> to vector<8x128xbf16>
    %c24 = arith.constant 24 : index
    %c0_14 = arith.constant 0 : index
    %11 = vector.load %arg5[%c24, %c0_14] : memref<72x128xbf16, #tpu.memory_space<vmem>>, vector<8x128xbf16>
    tpu.vector_store %arg5[%c24, %c0_14], %10 {strides = array<i32>} : memref<72x128xbf16, #tpu.memory_space<vmem>>, vector<8x128xbf16>,
    %c0_15 = arith.constant 0 : index
    %c24_16 = arith.constant 24 : index
    %c0_17 = arith.constant 0 : index
    %12 = vector.load %arg3[%c0_15, %c24_16, %c0_17] : memref<1x32x256xbf16, #tpu.memory_space<vmem>>, vector<1x8x128xbf16>
    %13 = vector.shape_cast %12 : vector<1x8x128xbf16> to vector<8x128xbf16>
    %c32 = arith.constant 32 : index
    %c0_18 = arith.constant 0 : index
    %14 = vector.load %arg5[%c32, %c0_18] : memref<72x128xbf16, #tpu.memory_space<vmem>>, vector<8x128xbf16>
    tpu.vector_store %arg5[%c32, %c0_18], %13 {strides = array<i32>} : memref<72x128xbf16, #tpu.memory_space<vmem>>, vector<8x128xbf16>,
    %c0_19 = arith.constant 0 : index
    %c16_20 = arith.constant 16 : index
    %c1_21 = arith.constant 1 : index
    %15 = vector.load %arg3[%c0_19, %c16_20, %c1_21] : memref<1x32x256xbf16, #tpu.memory_space<vmem>>, vector<1x8x128xbf16>
    %16 = vector.shape_cast %15 : vector<1x8x128xbf16> to vector<8x128xbf16>
    %c40 = arith.constant 40 : index
    %c0_22 = arith.constant 0 : index
    %17 = vector.load %arg5[%c40, %c0_22] : memref<72x128xbf16, #tpu.memory_space<vmem>>, vector<8x128xbf16>
    tpu.vector_store %arg5[%c40, %c0_22], %16 {strides = array<i32>} : memref<72x128xbf16, #tpu.memory_space<vmem>>, vector<8x128xbf16>,
    %c0_23 = arith.constant 0 : index
    %c0_24 = arith.constant 0 : index
    %c5 = arith.constant 5 : index
    %18 = vector.load %arg3[%c0_23, %c0_24, %c5] : memref<1x32x256xbf16, #tpu.memory_space<vmem>>, vector<1x8x128xbf16>
    %19 = vector.shape_cast %18 : vector<1x8x128xbf16> to vector<8x128xbf16>
    %c48 = arith.constant 48 : index
    %c0_25 = arith.constant 0 : index
    %20 = vector.load %arg5[%c48, %c0_25] : memref<72x128xbf16, #tpu.memory_space<vmem>>, vector<8x128xbf16>
    tpu.vector_store %arg5[%c48, %c0_25], %19 {strides = array<i32>} : memref<72x128xbf16, #tpu.memory_space<vmem>>, vector<8x128xbf16>,
    %c0_26 = arith.constant 0 : index
    %c8_27 = arith.constant 8 : index
    %c5_28 = arith.constant 5 : index
    %21 = vector.load %arg3[%c0_26, %c8_27, %c5_28] : memref<1x32x256xbf16, #tpu.memory_space<vmem>>, vector<1x8x128xbf16>
    %22 = vector.shape_cast %21 : vector<1x8x128xbf16> to vector<8x128xbf16>
    %c56 = arith.constant 56 : index
    %c0_29 = arith.constant 0 : index
    %23 = vector.load %arg5[%c56, %c0_29] : memref<72x128xbf16, #tpu.memory_space<vmem>>, vector<8x128xbf16>
    tpu.vector_store %arg5[%c56, %c0_29], %22 {strides = array<i32>} : memref<72x128xbf16, #tpu.memory_space<vmem>>, vector<8x128xbf16>,
    %c0_30 = arith.constant 0 : index
    %c0_31 = arith.constant 0 : index
    %c6 = arith.constant 6 : index
    %24 = vector.load %arg3[%c0_30, %c0_31, %c6] : memref<1x32x256xbf16, #tpu.memory_space<vmem>>, vector<1x8x128xbf16>
    %25 = vector.shape_cast %24 : vector<1x8x128xbf16> to vector<8x128xbf16>
    %c64 = arith.constant 64 : index
    %c0_32 = arith.constant 0 : index
    %26 = vector.load %arg5[%c64, %c0_32] : memref<72x128xbf16, #tpu.memory_space<vmem>>, vector<8x128xbf16>
    tpu.vector_store %arg5[%c64, %c0_32], %25 {strides = array<i32>} : memref<72x128xbf16, #tpu.memory_space<vmem>>, vector<8x128xbf16>,
    %c0_33 = arith.constant 0 : index
    %c0_34 = arith.constant 0 : index
    %27 = vector.load %arg1[%c0_33, %c0_34] : memref<16x72xbf16, #tpu.memory_space<vmem>>, vector<16x72xbf16>
    %c0_35 = arith.constant 0 : index
    %c0_36 = arith.constant 0 : index
    %28 = vector.load %arg5[%c0_35, %c0_36] : memref<72x128xbf16, #tpu.memory_space<vmem>>, vector<72x128xbf16>
    %cst = arith.constant dense<0.000000e+00> : vector<16x128xf32>
    %29 = tpu.matmul %27, %28, %cst {dimension_numbers = #tpu.dot_dimension_numbers<[1], [0], [0], [1], [0, 0, 1, 1], [], []>} : vector<16x72xbf16>, vector<72x128xbf16>, vector<16x128xf32> -> vector<16x128xf32>
    %c0_37 = arith.constant 0 : index
    %c0_38 = arith.constant 0 : index
    %30 = vector.load %arg2[%c0_37, %c0_38] : memref<16x1xf32, #tpu.memory_space<vmem>>, vector<16x1xf32>
    %31 = vector.broadcast %30 : vector<16x1xf32> to vector<16x128xf32>
    %32 = arith.addf %29, %31 : vector<16x128xf32>
    %cst_39 = arith.constant 0.000000e+00 : f32
    %cst_40 = arith.constant 6.000000e+00 : f32
    %33 = vector.broadcast %cst_39 : f32 to vector<16x128xf32>
    %34 = arith.maximumf %33, %32 : vector<16x128xf32>
    %35 = vector.broadcast %cst_40 : f32 to vector<16x128xf32>
    %36 = arith.minimumf %35, %34 : vector<16x128xf32>
    %c0_41 = arith.constant 0 : index
    %c0_42 = arith.constant 0 : index
    %37 = vector.load %arg4[%c0_41, %c0_42] : memref<16x128xf32, #tpu.memory_space<vmem>>, vector<16x128xf32>
    tpu.vector_store %arg4[%c0_41, %c0_42], %36 {strides = array<i32>} : memref<16x128xf32, #tpu.memory_space<vmem>>, vector<16x128xf32>,
    return
  }
  func.func @transform_0(%arg0: i32) -> (i32, i32) {
    %c0_i32 = arith.constant 0 : i32
    %c0_i32_0 = arith.constant 0 : i32
    %c0_i32_1 = arith.constant 0 : i32
    return %c0_i32, %c0_i32_0 : i32, i32
  }
  func.func @transform_1(%arg0: i32) -> (i32, i32) {
    %c0_i32 = arith.constant 0 : i32
    %c0_i32_0 = arith.constant 0 : i32
    %c0_i32_1 = arith.constant 0 : i32
    return %c0_i32, %c0_i32_0 : i32, i32
  }
  func.func @transform_2(%arg0: i32) -> (i32, i32, i32) {
    %c0_i32 = arith.constant 0 : i32
    %c0_i32_0 = arith.constant 0 : i32
    %c0_i32_1 = arith.constant 0 : i32
    return %arg0, %c0_i32, %c0_i32_0 : i32, i32, i32
  }
  func.func @transform_3(%arg0: i32) -> (i32, i32) {
    %c0_i32 = arith.constant 0 : i32
    %c0_i32_0 = arith.constant 0 : i32
    return %c0_i32, %arg0 : i32, i32
  }
}

</mosaic_0001>

<bundles_post_ra>
// kernel: skip_encoder_forward.2
= control target key start
LH: loop header
LB: loop body
LE: loop exit
PB: predicated region body
PF: predicated region fallthrough
CT: control target
= control target key end

     0   :  { %s489_s12 = smov 0   ;;  %s559_s0 = inlined_call_operand.vmem [shape: bf16[8,27], index: 0, kind: input, shape index: {}]   ;;  %s560_s1 = inlined_call_operand.vmem [shape: f32[8,1], index: 1, kind: input, shape index: {}]   ;;  %s561_s2 = inlined_call_operand.vmem [shape: bf16[2,12,256], index: 2, kind: input, shape index: {}]   ;;  %s562_s3 = inlined_call_operand.vmem [shape: f32[8,256], index: 3, kind: output, shape index: {}]  }
   0x1 LB: > { %s418_s13 = sadd.s32 4294967295, %s462_s12   ;;  %p422_p0 = scmp.ge.s32.totalorder %s462_s12, 1  ;;  %s462_s12 = sphi %s489_s12, %s13_s12  }
   0x2   : > { %p137_p1 = scmp.lt.s32.totalorder %s462_s12, 3 }
   0x4   : > { %p138_p2 = pnand %p422_p0, %p137_p1 }
   0x5   : > { %p160_p3 = scmp.lt.s32.totalorder (!%p138_p2), %s418_s13, 1  ;;  %s464_s18 = smov (!%p138_p2), 119  }
   0x6   : > { %141 = sbr.rel (%p138_p2) target bundleno = 299 (0x12b), region = 32  ;;  %s465_s19 = smov (!%p138_p2), 127  }
   0x7   : > { %s466_s20 = smov (!%p138_p2), 118  }
   0xb   : > { %s568_s13 = smov (!%p160_p3, %s418_s13), 1  ;;  %vm201_vm0 = vsmask.f32 256  ;;  %vm248_vm1 = vsmask.f32 4368  ;;  %vm240_vm3 = vcmask 1043458  }
   0xc   : > { %s438_s14 = sshll.u32 %s568_s13, 4  ;;  %vm249_vm2 = vmor %vm201_vm0, %vm248_vm1  ;;  %vm241_vm4 = vsmask.f32 3328  ;;  %v243_v20 = vld [vmem:[#allocation2 + $0x4] sm:$0xc]  ;;  %vm171_vm6 = vcmask 1041408  }
   0xd   : > { %s503_s17 = scalar_lea.vmem %s561_s2, %s438_s14  ;;  %vm242_vm5 = vmand %vm240_vm3, %vm241_vm4  ;;  %vm172_vm7 = vsmask.f32 1280  ;;  %v174_v24 = vld [vmem:[#allocation2] sm:$0x3]  ;;  %vm194_vm9 = vcmask 1039360   ;;  %vm178_vm11 = vcmask 1042433  }
   0xe   : > { %v278_v0 = vld [vmem:[%s503_s17] sm:$0x33]  ;;  %v246_v5 = vld [vmem:[%s503_s17] sm:$0x88]  ;;  %v247_v6 = vld [vmem:[%s503_s17 + $0x8] sm:$0x11] }
   0xf   : > { %v292_v1 = vld [vmem:[%s503_s17] sm:$0x66]  ;;  %v280_v3 = vrot.slane %v278_v0, 7  ;;  %v253_v8 = vshrl.u32 %v246_v5, 16  ;;  %v258_v9 = vshll.u32 %v247_v6, 16  ;;  %v251_v14 = vshll.u32 %v246_v5, 16  ;;  %vm516_vm8 = vmand %vm171_vm6, %vm172_vm7 }
  0x10   : > { %v184_v2 = vld [vmem:[%s503_s17] sm:$0x33]  ;;  %v294_v4 = vrot.slane %v292_v1, 7  ;;  %v230_v15 = vld [vmem:[%s503_s17 + $0x8] sm:$0x3]  ;;  %vm271_vm12 = vcmask 1043459  }
  0x11   : > { %281 = vrot.lane.b32.xlu0 %v280_v3, %s464_s18  ;;  %v186_v7 = vrot.slane %v184_v2, 5  ;;  %v426_v10 = vrot.slane %v253_v8, 11  ;;  %v305_v13 = vld [vmem:[%s503_s17] sm:$0x33]  ;;  %v232_v16 = vshrl.u32 %v230_v15, 16  ;;  %v235_v17 = vshll.u32 %v230_v15, 16 }
  0x12   : > { %295 = vrot.lane.b32.xlu1 %v294_v4, %s464_s18  ;;  %v170_v25 = vld [vmem:[%s503_s17] sm:$0x3]  ;;  %vm179_vm10 = vsmask.f32 7942  ;;  %vm272_vm13 = vsmask.f32 7950 }
  0x13   : > { %v187_v11 = vrot.slane %v186_v7, 4  ;;  %v260_v12 = vsel %vm249_vm2, %v426_v10, %v258_v9  ;;  %v234_v18 = vrot.slane %v232_v16, 6  ;;  %v237_v19 = vrot.slane %v235_v17, 7  ;;  %vm180_vm14 = vmand %vm178_vm11, %vm179_vm10  ;;  %v177_v30 = vld [vmem:[%s503_s17] sm:$0x6]  ;;  %s425_s25 = sshll.u32 %s568_s13, 3 }
  0x14   : > { %263 = vrot.lane.b32.xlu2 %v260_v12, %s465_s19  ;;  %v175_v27 = vsel %vm516_vm8, %v170_v25, %v174_v24  ;;  %vm273_vm15 = vmand %vm271_vm12, %vm272_vm13  ;;  %vm287_vm1 = vsmask.f32 2304  ;;  %v206_v38 = vld [vmem:[%s503_s17] sm:$0x8]  ;;  %vm284_vm2 = vcmask 973824   ;;  %v467_v47 = vmov 0   ;;  %s168_s28 = scalar_lea.vmem %s562_s3, %s425_s25 }
  0x15   : > { %v238_v21 = vor.u32 %v237_v19, %v234_v18  ;;  %176 = vst [vmem:[#allocation2] sm:$0x3] %v175_v27  ;;  %vm288_vm4 = vmand %vm178_vm11, %vm287_vm1  ;;  %v289_v41 = vld [vmem:[#allocation2 + $0x8] sm:$0x6]  ;;  %v211_v43 = vshrl.u32 %v206_v38, 16  ;;  %v214_v44 = vshll.u32 %v206_v38, 16  ;;  %454 = vset.pattern.permute.xlu1 %v467_v47  ;;  %455 = vset.pattern.permute.xlu0 %v467_v47 }
  0x16   : > { %v321_v45 = vld [vmem:[%s560_s1] sm:$0xff]  ;;  %vm300_vm10 = vsmask.f32 7946  ;;  %v207_v51 = vld [vmem:[%s503_s17 + $0x8] sm:$0x1]  ;;  %vm310_vm11 = vcmask 965632  }
  0x17   : > { %v244_v22 = vsel %vm242_vm5, %v238_v21, %v243_v20  ;;  %vm200_vm5 = vcmask 1040384   ;;  %v213_v49 = vrot.slane %v211_v43, 6  ;;  %v216_v50 = vrot.slane %v214_v44, 7  ;;  %v203_v56 = vld [vmem:[#allocation2 + $0x4] sm:$0x1]  ;;  %vm301_vm13 = vmand %vm240_vm3, %vm300_vm10 }
  0x18   : > { %245 = vst [vmem:[#allocation2 + $0x4] sm:$0xc] %v244_v22  ;;  %vm535_vm12 = vmand %vm200_vm5, %vm201_vm0  ;;  %v313_v58 = vld [vmem:[#allocation2 + $0xc] sm:$0x3]  ;;  %v220_v61 = vshll.u32 %v207_v51, 16 }
  0x19   : > { %190 = vrot.lane.b32.xlu0 %v187_v11, %s465_s19  ;;  %v217_v60 = vor.u32 %v216_v50, %v213_v49  ;;  %vm208_vm0 = vsmask.f32 5392  ;;  %v468_v11 = vmov 65535   ;;  %v316_v21 = vld [vmem:[%s559_s0] sm:$0xf] }
  0x1a   : > { %307 = vrot.lane.b32.xlu1 %v305_v13, %s466_s20  ;;  %v222_v6 = vrot.slane %v220_v61, 7  ;;  %vm209_vm3 = vmor %vm172_vm7, %vm208_vm0 }
  0x1b   : > { %v218_v5 = vrot.slane %v217_v60, 4 }
  0x1c   : > { %261 = vrot.lane.b32.xlu2 %v251_v14, %s465_s19  ;;  %v181_v32 = vld [vmem:[#allocation2] sm:$0x6] }
  0x1d   : > { %v182_v35 = vsel %vm180_vm14, %v177_v30, %v181_v32  ;;  %vm225_vm14 = vsmask.f32 7938  ;;  %v223_v9 = vsel %vm209_vm3, %v218_v5, %v222_v6 }
  0x1e   : > { %183 = vst [vmem:[#allocation2] sm:$0x6] %v182_v35  ;;  %vm226_vm1 = vmand %vm171_vm6, %vm225_vm14  ;;  %vm338_vm6 = vcmask 220160  }
  0x1f   : > { %v274_v34 = vld [vmem:[#allocation2 + $0x4] sm:$0x8] }
  0x21   : > { %188 = vrot.lane.b32.xlu0 %v186_v7, %s465_s19 }
  0x22   : > { %324 = vperm.xlu1 %454, %v321_v45  }
  0x6e   : > { %v264_v26 = vpop.permute.xlu2 %263 }
  0x6f   : > { %v266_v28 = vrot.slane %v264_v26, 4 }
  0x71   : > { %v268_v29 = vsel %vm194_vm9, %v264_v26, %v266_v28 }
  0x72   : > { %277 = vst [vmem:[#allocation2 + $0x8] sm:$0x1] %v268_v29 }
  0x76   : > { %v262_v31 = vpop.permute.xlu2 %261 }
  0x77   : > { %v265_v33 = vrot.slane %v262_v31, 4 }
  0x79   : > { %v267_v36 = vsel %vm194_vm9, %v262_v31, %v265_v33 }
  0x7a   : > { %v275_v37 = vsel %vm273_vm15, %v267_v36, %v274_v34  ;;  %vm342_vm15 = vcmask 1044480  }
  0x7b   : > { %276 = vst [vmem:[#allocation2 + $0x4] sm:$0x8] %v275_v37  ;;  %v344_v12 = vsel %vm342_vm15, 4294967295, %v468_v11 }
  0x83   : > { %v282_v39 = vpop.permute.xlu0 %281 }
  0x84   : > { %v296_v40 = vpop.permute.xlu1 %295  ;;  %v283_v42 = vrot.slane %v282_v39, 4 }
  0x85   : > { %v297_v52 = vrot.slane %v296_v40, 4 }
  0x86   : > { %v285_v46 = vsel %vm284_vm2, %v282_v39, %v283_v42 }
  0x87   : > { %v290_v48 = vsel %vm288_vm4, %v285_v46, %v289_v41  ;;  %v298_v0 = vsel %vm284_vm2, %v296_v40, %v297_v52  ;;  %vm343_vm2 = vcmask 1045504  }
  0x88   : > { %291 = vst [vmem:[#allocation2 + $0x8] sm:$0x6] %v290_v48  ;;  %v345_v17 = vsel %vm343_vm2, %v344_v12, 0 }
  0x8b   : > { %v191_v53 = vpop.permute.xlu0 %190 }
  0x8c   : > { %v308_v54 = vpop.permute.xlu1 %307  ;;  %v193_v57 = vrot.slane %v191_v53, 4 }
  0x8d   : > { %v309_v59 = vrot.slane %v308_v54, 4 }
  0x8e   : > { %v196_v62 = vsel %vm194_vm9, %v191_v53, %v193_v57 }
  0x8f   : > { %v311_v63 = vsel %vm310_vm11, %v308_v54, %v309_v59  ;;  %v302_v1 = vld [vmem:[#allocation2 + $0x8] sm:$0xc]  ;;  %v204_v2 = vsel %vm535_vm12, %v196_v62, %v203_v56 }
  0x90   : > { %v314_v3 = vsel %vm516_vm8, %v311_v63, %v313_v58  ;;  %v303_v4 = vsel %vm301_vm13, %v298_v0, %v302_v1  ;;  %205 = vst [vmem:[#allocation2 + $0x4] sm:$0x1] %v204_v2 }
  0x91   : > { %304 = vst [vmem:[#allocation2 + $0x8] sm:$0xc] %v303_v4 }
  0x92   : > { %315 = vst [vmem:[#allocation2 + $0xc] sm:$0x3] %v314_v3 }
  0x93   : > { %v189_v7 = vpop.permute.xlu0 %188 }
  0x94   : > { %v192_v8 = vrot.slane %v189_v7, 4  ;;  %v325_v22 = vpop.permute.xlu1 %324 }
  0x96   : > { %v195_v10 = vsel %vm194_vm9, %v189_v7, %v192_v8 }
  0x97   : > { %v227_v13 = vld [vmem:[#allocation2 + $0x4] sm:$0x3]  ;;  %199 = vst [vmem:[#allocation2] sm:$0x8] %v195_v10 }
  0x98   : > { %v228_v14 = vsel %vm226_vm1, %v223_v9, %v227_v13  ;;  %v433_v15 = vld [vmem:[#allocation2 + $0x8] sm:$0xf] }
  0x99   : > { %229 = vst [vmem:[#allocation2 + $0x4] sm:$0x3] %v228_v14  ;;  %v440_v16 = vld [vmem:[#allocation2 + $0x8] sm:$0x30] }
  0x9a   : > { %v434_v18 = vor.u32 %v440_v16, %v433_v15 }
  0x9c   : > { %v347_v19 = vand.u32 %v434_v18, %v345_v17 }
  0x9e   : > { %355 = vmatpush.bf16.msra.mxu0 %v347_v19 }
  0xa0   : > { %v439_v20 = vld [vmem:[#allocation2] sm:$0xff] }
  0xa2   : > { %356 = vmatpush.bf16.msra.mxu0 %v439_v20 }
  0xa5   : > { %435 = vmatmul.msk.bf16.vlgmr.msra.gmra.mxu0 %vm338_vm6, %v316_v21 }
 0x122   : > { %v358_v23 = vpop.f32.mrf.mxu0 }
 0x123   : > { %v359_v24 = vadd.f32 %v358_v23, %v325_v22 }
 0x125   : > { %v362_v25 = vmax.f32 %v359_v24, 0.0 }
 0x127   : > { %v363_v26 = vmin.f32 %v362_v25, 6.0 }
 0x129   : > { %364 = vst [vmem:[%s168_s28] sm:$0xff] %v363_v26 }
 0x12a   : > { %v360_v27 = vpop.f32.mrf.mxu0 }
 0x12b PF: > { %s13_s12 = sadd.s32 1, %s462_s12  }
 0x12c   : > { %p10_p4 = scmp.ge.s32.totalorder %s13_s12, 4  }
 0x12e   :  { %12 = sbr.rel (!%p10_p4) target bundleno = 1 (0x1), region = 62 }

// kernel: skip_encoder_forward.3
= control target key start
LH: loop header
LB: loop body
LE: loop exit
PB: predicated region body
PF: predicated region fallthrough
CT: control target
= control target key end

     0   :  { %s513_s12 = smov 0   ;;  %s515_s13 = smov 0   ;;  %s577_s0 = inlined_call_operand.vmem [shape: bf16[16,72], index: 0, kind: input, shape index: {}]   ;;  %s578_s1 = inlined_call_operand.vmem [shape: f32[16,1], index: 1, kind: input, shape index: {}]   ;;  %s579_s2 = inlined_call_operand.vmem [shape: bf16[2,32,256], index: 2, kind: input, shape index: {}]   ;;  %s580_s3 = inlined_call_operand.vmem [shape: f32[16,256], index: 3, kind: output, shape index: {}]  }
   0x1   :  { %s517_s14 = smov 0  }
   0x2 LB: > { %s526_s15 = sadd.s32 4294967295, %s487_s14   ;;  %s528_s16 = sadd.s32 1, %s487_s14   ;;  %s487_s14 = sphi %s517_s14, %s584_s14   ;;  %s483_s13 = sphi %s515_s13, %s583_s13   ;;  %s479_s12 = sphi %s513_s12, %s582_s12  }
   0x3   : > { %s85_s17 = ssub.s32 %s487_s14, %s528_s16  ;;  %s88_s18 = sadd.s32 1, %s483_s13 }
   0x4   : > { %p86_p0 = scmp.eq.s32.totalorder %s85_s17, 0  ;;  %p98_p1 = scmp.ne.s32.totalorder %s483_s13, %s479_s12 }
   0x5   : > { %p99_p2 = scmp.eq.s32.totalorder %s526_s15, 1  ;;  %p400_p3 = scmp.ge.s32.totalorder %s487_s14, 1 }
   0x6   : > { %s536_s19 = scalar_select %p86_p0, %s483_s13, %s88_s18  }
   0x7   : > { %p538_p4 = por %p99_p2, %p98_p1  ;;  %p137_p5 = scmp.lt.s32.totalorder %s487_s14, 3 }
   0x9   : > { %p138_p6 = pnand %p400_p3, %p137_p5 }
   0xa   : > { %p160_p7 = scmp.lt.s32.totalorder (!%p138_p6), %s526_s15, 1  ;;  %s489_s26 = smov (!%p138_p6), 122  }
   0xb   : > { %141 = sbr.rel (%p138_p6) target bundleno = 320 (0x140), region = 32  ;;  %s490_s27 = smov (!%p138_p6), 123  }
   0xc   : > { %s491_s28 = smov (!%p138_p6), 127   ;;  %s157_s8 = sand.u32 (!%p138_p6), 1, %s479_s12  }
   0xd   : > { %s401_s9 = sshll.u32 (!%p138_p6), %s157_s8, 4 }
   0xe   : > { %s159_s10 = scalar_lea.vmem (!%p138_p6), [#allocation3], %s401_s9 }
  0x10   : > { %s161_s21 = scalar_select %p160_p7, %s526_s15, 1  ;;  %vm175_vm0 = vcmask 1039360   ;;  %vm213_vm1 = vcmask 998400   ;;  %vm196_vm2 = vcmask 1006592   ;;  %v229_v16 = vld [vmem:[%s578_s1 + $0x8] sm:$0xff]  ;;  %v228_v17 = vld [vmem:[%s578_s1] sm:$0xff] }
  0x11   : > { %v492_v18 = vmov 0   ;;  %vm276_vm3 = vcmask 1043456   ;;  %v430_v33 = vld [vmem:[%s577_s0] sm:$0xff]  ;;  %vm272_vm4 = vcmask 588800   ;;  %s426_s11 = sshll.u32 (%p538_p4), %s526_s15, 3 }
  0x12   : > { %s429_s22 = sshll.u32 %s161_s21, 5  ;;  %464 = vset.pattern.permute.xlu0 %v492_v18  ;;  %463 = vset.pattern.permute.xlu2 %v492_v18  ;;  %s308_s17 = scalar_lea.vmem (%p538_p4), %s580_s3, %s426_s11 }
  0x13   : > { %s164_s25 = scalar_lea.vmem %s579_s2, %s429_s22 }
  0x14   : > { %v208_v0 = vld [vmem:[%s164_s25] sm:$0xff]  ;;  %v200_v1 = vld [vmem:[%s164_s25 + $0x8] sm:$0xff]  ;;  %v183_v2 = vld [vmem:[%s164_s25 + $0x10] sm:$0xff] }
  0x15   : > { %210 = vrot.lane.b32.xlu0 %v208_v0, %s489_s26  ;;  %202 = vrot.lane.b32.xlu1 %v200_v1, %s490_s27  ;;  %v181_v4 = vld [vmem:[%s164_s25 + $0x18] sm:$0xf]  ;;  %v179_v7 = vld [vmem:[%s164_s25 + $0x10] sm:$0xf] }
  0x16   : > { %172 = vrot.lane.b32.xlu2 %v208_v0, %s491_s28  ;;  %182 = vst [vmem:[#allocation2 + $0x10] sm:$0xf] %v181_v4  ;;  %v166_v8 = vld [vmem:[%s164_s25] sm:$0xf]  ;;  %v168_v9 = vld [vmem:[%s164_s25 + $0x8] sm:$0xf] }
  0x17   : > { %180 = vst [vmem:[#allocation2 + $0xc] sm:$0xf] %v179_v7 }
  0x18   : > { %167 = vst [vmem:[#allocation2] sm:$0xf] %v166_v8 }
  0x19   : > { %169 = vst [vmem:[#allocation2 + $0x4] sm:$0xf] %v168_v9 }
  0x1d   : > { %193 = vrot.lane.b32.xlu0 %v208_v0, %s490_s27  ;;  %185 = vrot.lane.b32.xlu1 %v183_v2, %s491_s28 }
  0x1e   : > { %232 = vperm.xlu2 %463, %v228_v17  }
  0x20   : > { %v431_v32 = vld [vmem:[#allocation2] sm:$0xff] }
  0x25   : > { %237 = vperm.xlu0 %464, %v229_v16  }
  0x70   : > { %v173_v3 = vpop.permute.xlu2 %172 }
  0x71   : > { %v174_v5 = vrot.slane %v173_v3, 4 }
  0x73   : > { %v176_v6 = vsel %vm175_vm0, %v173_v3, %v174_v5 }
  0x74   : > { %178 = vst [vmem:[#allocation2 + $0x8] sm:$0xf] %v176_v6 }
  0x78   : > { %v233_v34 = vpop.permute.xlu2 %232 }
  0x7b   : > { %v432_v31 = vld [vmem:[#allocation2 + $0x8] sm:$0xff] }
  0x87   : > { %v211_v10 = vpop.permute.xlu0 %210  ;;  %v203_v11 = vpop.permute.xlu1 %202 }
  0x88   : > { %v212_v12 = vrot.slane %v211_v10, 4  ;;  %v204_v13 = vrot.slane %v203_v11, 4 }
  0x8a   : > { %v214_v14 = vsel %vm213_vm1, %v211_v10, %v212_v12  ;;  %v205_v15 = vsel %vm196_vm2, %v203_v11, %v204_v13 }
  0x8b   : > { %216 = vst [vmem:[#allocation2 + $0x20] sm:$0xf] %v214_v14 }
  0x8c   : > { %207 = vst [vmem:[#allocation2 + $0x1c] sm:$0xf] %v205_v15 }
  0x8f   : > { %v194_v19 = vpop.permute.xlu0 %193  ;;  %v186_v20 = vpop.permute.xlu1 %185 }
  0x90   : > { %v195_v21 = vrot.slane %v194_v19, 4  ;;  %v187_v22 = vrot.slane %v186_v20, 4 }
  0x92   : > { %v197_v23 = vsel %vm196_vm2, %v194_v19, %v195_v21  ;;  %v188_v24 = vsel %vm175_vm0, %v186_v20, %v187_v22  ;;  %v227_v25 = vld [vmem:[#allocation2 + $0x20] sm:$0xf] }
  0x93   : > { %199 = vst [vmem:[#allocation2 + $0x18] sm:$0xf] %v197_v23  ;;  %v262_v26 = vunpack.c.l.b16 %v227_v25 }
  0x94   : > { %190 = vst [vmem:[#allocation2 + $0x14] sm:$0xf] %v188_v24 }
  0x95   : > { %v267_v27 = vpack.c.b16 %v262_v26, %v262_v26 }
  0x97   : > { %v278_v28 = vsel %vm276_vm3, %v267_v27, 0  ;;  %v238_v39 = vpop.permute.xlu0 %237 }
  0x98   : > { %283 = vmatpush.bf16.msra.mxu0 %v278_v28 }
  0x9a   : > { %v434_v29 = vld [vmem:[#allocation2 + $0x18] sm:$0xff] }
  0x9b   : > { %v433_v30 = vld [vmem:[#allocation2 + $0x10] sm:$0xff] }
  0x9c   : > { %284 = vmatpush.bf16.msra.mxu0 %v434_v29 }
  0xa0   : > { %285 = vmatpush.bf16.msra.mxu0 %v433_v30 }
  0xa4   : > { %286 = vmatpush.bf16.msra.mxu0 %v432_v31 }
  0xa8   : > { %287 = vmatpush.bf16.msra.mxu0 %v431_v32 }
  0xab   : > { %424 = vmatmul.msk.bf16.vlgmr.msra.gmra.mxu0 %vm272_vm4, %v430_v33 }
 0x128   : > { %v289_v35 = vpop.f32.mrf.mxu0 }
 0x129   : > { %v290_v36 = vadd.f32 %v289_v35, %v233_v34 }
 0x12b   : > { %v294_v37 = vmax.f32 %v290_v36, 0.0 }
 0x12d   : > { %v296_v38 = vmin.f32 %v294_v37, 6.0 }
 0x12f   : > { %298 = vst [vmem:[%s159_s10] sm:$0xff] %v296_v38 }
 0x130   : > { %v291_v40 = vpop.f32.mrf.mxu0 }
 0x131   : > { %v292_v41 = vadd.f32 %v291_v40, %v238_v39 }
 0x133   : > { %v295_v42 = vmax.f32 %v292_v41, 0.0  ;;  %306 = sbr.rel (!%p538_p4) target bundleno = 320 (0x140), region = 36 }
 0x135   : > { %v297_v43 = vmin.f32 %v295_v42, 6.0 }
 0x136   : > { %v339_v44 = vld [vmem:[%s159_s10] sm:$0xff] (%p538_p4) }
 0x137   : > { %299 = vst [vmem:[%s159_s10 + $0x8] sm:$0xff] %v297_v43 }
 0x138   : > { %340 = vst [vmem:[%s308_s17] sm:$0xff] %v339_v44 }
 0x13e   : > { %v341_v45 = vld [vmem:[%s159_s10 + $0x8] sm:$0xff] }
 0x13f   : > { %342 = vst [vmem:[%s308_s17 + $0x10] sm:$0xff] %v341_v45 }
 0x140 PF: > { %p10_p8 = scmp.ge.s32.totalorder %s528_s16, 4   ;;  %s582_s12 = smov %s483_s13 }
 0x141   : > { %s583_s13 = smov %s536_s19  ;;  %s584_s14 = smov %s528_s16 }
 0x142   :  { %12 = sbr.rel (!%p10_p8) target bundleno = 2 (0x2), region = 100 }

</bundles_post_ra>
